<compile_context>
chip_gen: v5e
topology: v5e:2x2
jax: 0.10.0
libtpu: 0.0.40
codegen_flags: <defaults>
</compile_context>

<pallas_src>
import jax
import jax.numpy as jnp
from jax import lax
from jax.experimental import pallas as pl
from jax.experimental.pallas import tpu as pltpu

EMBEDDING_SIZE1 = 32     # stands in for `args.dim`
LANE = 128               # TPU lane width: feature/embedding dims padded to this
SUBLANE = 8              # sublane granule for row tiles
TM = 256                 # max node rows per grid tile


# ----------------------------------------------------------------------------
# Pallas kernel: one tile of  tanh(gather(TW, ids) + b)
#   gather is realized as a one-hot (TM, num_nodes) @ TW MXU matmul against the
#   VMEM-resident hoisted table.
# ----------------------------------------------------------------------------
def _enc_kernel(ids_ref,    # VMEM (TM, 1)            int32 node ids for this tile
                tw_ref,     # VMEM (rows_pad, d_pad)  hoisted table T @ W (resident)
                b_ref,      # VMEM (1, d_pad)         encoder bias (resident)
                o_ref):     # VMEM (TM, d_pad)        output tile
    ids = ids_ref[...]                                        # (TM, 1) int32
    tm = ids.shape[0]
    rows_pad = tw_ref.shape[0]

    # one-hot selection matrix; ids outside [0, rows_pad) select nothing
    cols = lax.broadcasted_iota(jnp.int32, (tm, rows_pad), 1)
    one_hot = (cols == ids).astype(tw_ref.dtype)              # (TM, rows_pad)

    # in-VMEM gather via MXU: (TM, rows_pad) @ (rows_pad, d_pad)
    y = jnp.dot(one_hot, tw_ref[...], preferred_element_type=jnp.float32)
    o_ref[...] = jnp.tanh(y + b_ref[...]).astype(o_ref.dtype)


# ----------------------------------------------------------------------------
# One-time prep (hoisted out of the per-batch forward path)
# ----------------------------------------------------------------------------
def prepare_encoder(emb_table, w_enc, b_enc):
    """Precompute TW = emb_table @ w_enc and pad to lane-dense shapes, once."""
    num_nodes, _ = emb_table.shape
    emb_dim = w_enc.shape[1]
    d_pad = pl.cdiv(emb_dim, LANE) * LANE
    rows_pad = pl.cdiv(max(num_nodes, SUBLANE), LANE) * LANE

    tw = emb_table.astype(jnp.float32) @ w_enc.astype(jnp.float32)
    tw_p = jnp.pad(tw, ((0, rows_pad - num_nodes), (0, d_pad - emb_dim)))
    b_p = jnp.pad(b_enc.reshape(1, -1).astype(jnp.float32),
                  ((0, 0), (0, d_pad - emb_dim)))
    return tw_p, b_p, emb_dim


def _pick_tile_rows(n, max_tile=TM):
    """Prefer >= 2 row tiles (both TensorCores on v7x), never below 8 rows."""
    half = -(-n // 2)                          # ceil(n / 2)
    half = -(-half // SUBLANE) * SUBLANE       # round up to sublane multiple
    return max(SUBLANE, min(max_tile, half))


# ----------------------------------------------------------------------------
# Wrapper: SDGNN.forward(nodes) == enc(nodes)
# ----------------------------------------------------------------------------
def sdgnn_forward(nodes, tw_p, b_p, emb_dim, *, tile_rows=None):
    n = nodes.shape[0]
    rows_pad, d_pad = tw_p.shape
    if tile_rows is None:
        tile_rows = _pick_tile_rows(n)

    n_pad = pl.cdiv(n, tile_rows) * tile_rows
    ids = jnp.pad(nodes.astype(jnp.int32), (0, n_pad - n)).reshape(n_pad, 1)

    grid = (n_pad // tile_rows,)

    out = pl.pallas_call(
        _enc_kernel,
        out_shape=jax.ShapeDtypeStruct((n_pad, d_pad), jnp.float32),
        grid_spec=pltpu.PrefetchScalarGridSpec(
            num_scalar_prefetch=0,
            grid=grid,
            in_specs=[
                pl.BlockSpec((tile_rows, 1), lambda i: (i, 0)),        # ids per tile
                pl.BlockSpec((rows_pad, d_pad), lambda i: (0, 0)),     # TW resident
                pl.BlockSpec((1, d_pad), lambda i: (0, 0)),            # bias resident
            ],
            out_specs=pl.BlockSpec((tile_rows, d_pad), lambda i: (i, 0)),
        ),
        compiler_params=pltpu.CompilerParams(
            dimension_semantics=("parallel",),     # independent row tiles (2 TCs on v7x)
            vmem_limit_bytes=32 * 1024 * 1024,
        ),
        cost_estimate=pl.CostEstimate(
            flops=2 * n_pad * rows_pad * d_pad,
            transcendentals=n_pad * d_pad,
            bytes_accessed=4 * (n_pad + rows_pad * d_pad + d_pad + n_pad * d_pad),
        ),
    )(ids, tw_p, b_p)

    return out[:n, :emb_dim]


# ----------------------------------------------------------------------------
# Deterministic parameter construction (shapes per SDGNN.__init__)
# ----------------------------------------------------------------------------
def make_params(key, num_nodes, feat_dim, emb_dim):
    k = jax.random.split(key, 8)
    params = {
        # synthetic encoder (stands in for `enc`)
        "emb_table": jax.random.normal(k[0], (num_nodes, feat_dim), jnp.float32) * 0.1,
        "w_enc":     jax.random.normal(k[1], (feat_dim, emb_dim), jnp.float32) * 0.1,
        "b_enc":     jnp.zeros((1, emb_dim), jnp.float32),
        # parameters declared in SDGNN.__init__ (used only in criterion, not forward)
        "w_score1": jax.random.normal(k[2], (emb_dim, 1), jnp.float32) * 0.1,
        "b_score1": jnp.zeros((1,), jnp.float32),
        "w_score2": jax.random.normal(k[3], (emb_dim, 1), jnp.float32) * 0.1,
        "b_score2": jnp.zeros((1,), jnp.float32),
        "w_fc":     jax.random.normal(k[4], (2 * emb_dim, 1), jnp.float32) * 0.1,
        "b_fc":     jnp.zeros((1,), jnp.float32),
    }
    return params


if __name__ == "__main__":
    key = jax.random.PRNGKey(0)

    NUM_NODES = 64          # size of the graph / embedding table
    FEAT_DIM = 32           # raw feature dim fed into the encoder
    BATCH = 200             # number of query nodes (exercises pad-to-tile path)

    params = make_params(key, NUM_NODES, FEAT_DIM, EMBEDDING_SIZE1)

    # one-time encoder prep (hoisted out of the per-batch path)
    tw_p, b_p, emb_dim = prepare_encoder(params["emb_table"], params["w_enc"],
                                         params["b_enc"])
    tw_p, b_p = jax.block_until_ready((tw_p, b_p))

    # deterministic batch of node ids
    nodes = jax.random.randint(jax.random.PRNGKey(1), (BATCH,), 0, NUM_NODES,
                               dtype=jnp.int32)

    embeds = sdgnn_forward(nodes, tw_p, b_p, emb_dim)
    embeds = jax.block_until_ready(embeds)

    # sanity: compare against plain-JAX reference of the same encoder
    ref = jnp.tanh(jnp.take(params["emb_table"], nodes, axis=0) @ params["w_enc"]
                   + params["b_enc"])
    assert embeds.shape == (BATCH, EMBEDDING_SIZE1)
    assert jnp.allclose(embeds, ref, atol=1e-4), "mismatch vs reference"

    print("KERNEL_OK")
</pallas_src>

<mosaic_0001>
module attributes {stable_mosaic.version = 11 : i64} {
  func.func @_enc_kernel(%arg0: i32, %arg1: memref<104x1xi32, #tpu.memory_space<vmem>>, %arg2: memref<128x128xf32, #tpu.memory_space<vmem>>, %arg3: memref<1x128xf32, #tpu.memory_space<vmem>>, %arg4: memref<104x128xf32, #tpu.memory_space<vmem>>) attributes {dimension_semantics = [#tpu.dimension_semantics<parallel>], iteration_bounds = array<i64: 2>, scalar_prefetch = 0 : i64, scratch_operands = 0 : i64, tpu.core_type = #tpu.core_type<tc>, window_params = [{transform_indices = @transform_0, window_bounds = array<i64: 104, 1>}, {pipeline_mode = #tpu.pipeline_mode<synchronous>, transform_indices = @transform_1, window_bounds = array<i64: 128, 128>}, {pipeline_mode = #tpu.pipeline_mode<synchronous>, transform_indices = @transform_2, window_bounds = array<i64: 1, 128>}, {transform_indices = @transform_3, window_bounds = array<i64: 104, 128>}]} {
    %c0 = arith.constant 0 : index
    %c0_0 = arith.constant 0 : index
    %0 = vector.load %arg1[%c0, %c0_0] : memref<104x1xi32, #tpu.memory_space<vmem>>, vector<104x1xi32>
    %1 = tpu.iota {dimensions = array<i32: 1>} : vector<104x128xi32>
    %2 = vector.broadcast %0 : vector<104x1xi32> to vector<104x128xi32>
    %3 = arith.cmpi eq, %1, %2 : vector<104x128xi32>
    %4 = arith.extui %3 : vector<104x128xi1> to vector<104x128xi32>
    %5 = arith.sitofp %4 : vector<104x128xi32> to vector<104x128xf32>
    %c0_1 = arith.constant 0 : index
    %c0_2 = arith.constant 0 : index
    %6 = vector.load %arg2[%c0_1, %c0_2] : memref<128x128xf32, #tpu.memory_space<vmem>>, vector<128x128xf32>
    %cst = arith.constant dense<0.000000e+00> : vector<104x128xf32>
    %7 = tpu.matmul %5, %6, %cst {dimension_numbers = #tpu.dot_dimension_numbers<[1], [0], [0], [1], [0, 0, 1, 1], [], []>} : vector<104x128xf32>, vector<128x128xf32>, vector<104x128xf32> -> vector<104x128xf32>
    %c0_3 = arith.constant 0 : index
    %c0_4 = arith.constant 0 : index
    %8 = vector.load %arg3[%c0_3, %c0_4] : memref<1x128xf32, #tpu.memory_space<vmem>>, vector<1x128xf32>
    %9 = vector.broadcast %8 : vector<1x128xf32> to vector<104x128xf32>
    %10 = arith.addf %7, %9 : vector<104x128xf32>
    %11 = math.tanh %10 : vector<104x128xf32>
    %c0_5 = arith.constant 0 : index
    %c0_6 = arith.constant 0 : index
    %12 = vector.load %arg4[%c0_5, %c0_6] : memref<104x128xf32, #tpu.memory_space<vmem>>, vector<104x128xf32>
    tpu.vector_store %arg4[%c0_5, %c0_6], %11 {strides = array<i32>} : memref<104x128xf32, #tpu.memory_space<vmem>>, vector<104x128xf32>,
    return
  }
  func.func @transform_0(%arg0: i32) -> (i32, i32) {
    %c0_i32 = arith.constant 0 : i32
    %c0_i32_0 = arith.constant 0 : i32
    return %arg0, %c0_i32 : i32, i32
  }
  func.func @transform_1(%arg0: i32) -> (i32, i32) {
    %c0_i32 = arith.constant 0 : i32
    %c0_i32_0 = arith.constant 0 : i32
    %c0_i32_1 = arith.constant 0 : i32
    return %c0_i32, %c0_i32_0 : i32, i32
  }
  func.func @transform_2(%arg0: i32) -> (i32, i32) {
    %c0_i32 = arith.constant 0 : i32
    %c0_i32_0 = arith.constant 0 : i32
    %c0_i32_1 = arith.constant 0 : i32
    return %c0_i32, %c0_i32_0 : i32, i32
  }
  func.func @transform_3(%arg0: i32) -> (i32, i32) {
    %c0_i32 = arith.constant 0 : i32
    %c0_i32_0 = arith.constant 0 : i32
    return %arg0, %c0_i32 : i32, i32
  }
}

</mosaic_0001>

<bundles_post_ra>
// kernel: tpu_custom_call.1
= control target key start
LH: loop header
LB: loop body
LE: loop exit
PB: predicated region body
PF: predicated region fallthrough
CT: control target
= control target key end

     0   :  { %8 = vsyncpa [#allocation3], 0  ;;  %s875_s0 = inlined_call_operand.vmem [shape: s32[208,1], index: 0, kind: input, shape index: {}]   ;;  %s876_s1 = inlined_call_operand.vmem [shape: f32[128,128], index: 1, kind: input, shape index: {}]   ;;  %s877_s2 = inlined_call_operand.vmem [shape: f32[1,128], index: 2, kind: input, shape index: {}]   ;;  %s878_s3 = inlined_call_operand.hbm [shape: f32[208,128], index: 3, kind: output, shape index: {}]  }
   0x1   :  { %10 = vsyncpa [#allocation3 + $0x1], 0  ;;  %s690_s12 = smov 0   ;;  %s692_s13 = smov 0  }
   0x2   :  { %s694_s14 = smov 0   ;;  %s696_s15 = smov 0  }
   0x3 LB: > { %s711_s16 = sadd.s32 4294967295, %s664_s15   ;;  %s445_s17 = sadd.s32 4294967294, %s664_s15   ;;  %s664_s15 = sphi %s696_s15, %s884_s15   ;;  %s660_s14 = sphi %s694_s14, %s883_s14   ;;  %s656_s13 = sphi %s692_s13, %s882_s13   ;;  %s652_s12 = sphi %s690_s12, %s881_s12  }
   0x4   : > { %s715_s18 = sadd.s32 1, %s664_s15   ;;  %s91_s19 = sadd.s32 1, %s660_s14 }
   0x5   : > { %s88_s20 = ssub.s32 %s664_s15, %s715_s18  ;;  %p101_p0 = scmp.ne.s32.totalorder %s660_s14, %s656_s13 }
   0x6   : > { %p89_p1 = scmp.eq.s32.totalorder %s88_s20, 0  ;;  %p102_p2 = scmp.eq.s32.totalorder %s711_s16, 1 }
   0x7   : > { %p107_p3 = scmp.ne.s32.totalorder %s656_s13, %s652_s12  ;;  %p108_p4 = scmp.eq.s32.totalorder %s445_s17, 1 }
   0x8   : > { %s726_s21 = scalar_select %p89_p1, %s660_s14, %s91_s19  }
   0x9   : > { %p728_p5 = por %p102_p2, %p101_p0  ;;  %p732_p6 = por %p108_p4, %p107_p3 }
   0xa   : > { %p448_p7 = scmp.ge.s32.totalorder %s664_s15, 1  ;;  %p141_p8 = scmp.lt.s32.totalorder %s664_s15, 3 }
   0xc   : > { %p142_p9 = pnand %p448_p7, %p141_p8 }
   0xd   : > { %s165_s24 = smul.u32 (!%p142_p9), 13, %s711_s16  ;;  %s162_s27 = sand.u32 (!%p142_p9), 1, %s656_s13  }
   0xe   : > { %145 = sbr.rel (%p142_p9) target bundleno = 317 (0x13d), region = 32  ;;  %s622_s19 = scalar_lea.hbm (!%p142_p9), %s878_s3, 208 }
   0xf   : > { %p166_p10 = scmp.lt.s32.totalorder (!%p142_p9), %s165_s24, 25  ;;  %s528_s29 = smul.u32 (!%p142_p9), 104, %s162_s27 }
  0x10   : > { %s479_s4 = smul.u32 (!%p142_p9), 104, %s711_s16  ;;  %s368_s16 = scalar_lea.sflag (!%p142_p9), [#allocation3], %s162_s27 }
  0x11   : > { %s814_s30 = scalar_lea.vmem (!%p142_p9), [#allocation2], %s528_s29 }
  0x12   : > { %s379_s7 = scalar_lea.hbm (!%p142_p9), %s878_s3, %s479_s4  ;;  %s380_s8 = sshll.u32 (!%p142_p9), %s814_s30, 4  ;;  %s381_s8 = int_to_ptr.vmem [resolvable:$true] %s380_s8 }
  0x13   : > { %v666_v0 = vmov 0   ;;  %s886_s24 = smov (!%p166_p10, %s165_s24), 25  ;;  %v280_v4 = vld [vmem:[%s876_s1 + $0x78] sm:$0xff]  ;;  %v279_v5 = vld [vmem:[%s876_s1 + $0x70] sm:$0xff]  ;;  %v278_v9 = vld [vmem:[%s876_s1 + $0x68] sm:$0xff]  ;;  %v185_v30 = vlaneseq  ;;  %v667_v33 = vmov 1.0  }
  0x14   : > { %573 = vset.pattern.permute.xlu1 %v666_v0  ;;  %572 = vset.pattern.permute.xlu0 %v666_v0  ;;  %s449_s25 = sshll.u32 %s886_s24, 3  ;;  %v277_v10 = vld [vmem:[%s876_s1 + $0x60] sm:$0xff]  ;;  %v276_v11 = vld [vmem:[%s876_s1 + $0x58] sm:$0xff]  ;;  %v275_v12 = vld [vmem:[%s876_s1 + $0x50] sm:$0xff]  ;;  %s382_s9 = sshll.u32 %s379_s7, 4  ;;  %s383_s9 = int_to_ptr.hbm [resolvable:$true] %s382_s9 }
  0x15   : > { %574 = vset.pattern.permute.xlu2 %v666_v0  ;;  %s742_s28 = scalar_lea.vmem %s875_s0, %s449_s25  ;;  %481 = vmatpush.msra.mxu2 %v280_v4  ;;  %v274_v16 = vld [vmem:[%s876_s1 + $0x48] sm:$0xff]  ;;  %v273_v17 = vld [vmem:[%s876_s1 + $0x40] sm:$0xff]  ;;  %v272_v18 = vld [vmem:[%s876_s1 + $0x38] sm:$0xff]  ;;  %v186_v31 = vand.u32 127, %v185_v30  ;;  %s616_s10 = sshra.s32 %s383_s9, 4  ;;  %s617_s10 = int_to_ptr.hbm [resolvable:$true] %s616_s10 }
  0x16   : > { %v178_v1 = vld [vmem:[%s742_s28 + $0x30] sm:$0xff]  ;;  %v177_v2 = vld [vmem:[%s742_s28 + $0x28] sm:$0xff]  ;;  %480 = vmatpush.msra.mxu1 %v280_v4  ;;  %482 = vmatpush.msra.mxu3 %v280_v4  ;;  %v179_v8 = vld [vmem:[%s742_s28 + $0x38] sm:$0xff]  ;;  %p623_p0 = scmp.lt.s32.totalorder %s617_s10, %s878_s3 }
  0x17   : > { %206 = vperm.xlu1 %573, %v178_v1   ;;  %203 = vperm.xlu0 %572, %v177_v2   ;;  %v174_v3 = vld [vmem:[%s742_s28 + $0x10] sm:$0xff]  ;;  %v181_v7 = vld [vmem:[%s742_s28 + $0x48] sm:$0xff]  ;;  %v183_v13 = vld [vmem:[%s742_s28 + $0x58] sm:$0xff] }
  0x18   : > { %194 = vperm.xlu2 %574, %v174_v3   ;;  %v182_v6 = vld [vmem:[%s742_s28 + $0x50] sm:$0xff]  ;;  %285 = vmatpush.msra.mxu0 %v280_v4  ;;  %v172_v14 = vld [vmem:[%s742_s28] sm:$0xff]  ;;  %v175_v15 = vld [vmem:[%s742_s28 + $0x18] sm:$0xff] }
  0x19   : > { %484 = vmatpush.msra.mxu2 %v279_v5  ;;  %483 = vmatpush.msra.mxu1 %v279_v5  ;;  %v271_v19 = vld [vmem:[%s876_s1 + $0x30] sm:$0xff]  ;;  %v180_v20 = vld [vmem:[%s742_s28 + $0x40] sm:$0xff]  ;;  %v173_v22 = vld [vmem:[%s742_s28 + $0x8] sm:$0xff] }
  0x1a   : > { %485 = vmatpush.msra.mxu3 %v279_v5  ;;  %286 = vmatpush.msra.mxu0 %v279_v5  ;;  %v184_v21 = vld [vmem:[%s742_s28 + $0x60] sm:$0xff]  ;;  %v270_v24 = vld [vmem:[%s876_s1 + $0x28] sm:$0xff]  ;;  %v268_v26 = vld [vmem:[%s876_s1 + $0x18] sm:$0xff] }
  0x1b   : > { %487 = vmatpush.msra.mxu2 %v278_v9  ;;  %486 = vmatpush.msra.mxu1 %v278_v9  ;;  %v176_v23 = vld [vmem:[%s742_s28 + $0x20] sm:$0xff]  ;;  %v267_v27 = vld [vmem:[%s876_s1 + $0x10] sm:$0xff]  ;;  %v266_v28 = vld [vmem:[%s876_s1 + $0x8] sm:$0xff]  ;;  %s618_s28 = scalar_lea.hbm %s617_s10, 104 }
  0x1c   : > { %488 = vmatpush.msra.mxu3 %v278_v9  ;;  %287 = vmatpush.msra.mxu0 %v278_v9  ;;  %v269_v25 = vld [vmem:[%s876_s1 + $0x20] sm:$0xff]  ;;  %p619_p11 = scmp.ne.s32.totalorder %s617_s10, %s618_s28  ;;  %p624_p1 = scmp.lt.s32.totalorder %s622_s19, %s618_s28 }
  0x1d   : > { %490 = vmatpush.msra.mxu2 %v277_v10  ;;  %489 = vmatpush.msra.mxu1 %v277_v10  ;;  %v265_v29 = vld [vmem:[%s876_s1] sm:$0xff] }
  0x1e   : > { %491 = vmatpush.msra.mxu3 %v277_v10  ;;  %288 = vmatpush.msra.mxu0 %v277_v10  ;;  %v808_v46 = vld [vmem:[%s877_s2] ss:$0 sm:$0xff]  ;;  %p620_p12 = pnand %p619_p11, %p728_p5  ;;  %p625_p2 = por %p624_p1, %p623_p0 }
  0x1f   : > { %218 = vperm.xlu1 %573, %v182_v6   ;;  %215 = vperm.xlu0 %572, %v181_v7  }
  0x20   : > { %209 = vperm.xlu2 %574, %v179_v8   ;;  %493 = vmatpush.msra.mxu2 %v276_v11  ;;  %p621_p13 = pneg %p620_p12 }
  0x21   : > { %492 = vmatpush.msra.mxu1 %v276_v11  ;;  %494 = vmatpush.msra.mxu3 %v276_v11 }
  0x22   : > { %496 = vmatpush.msra.mxu2 %v275_v12  ;;  %289 = vmatpush.msra.mxu0 %v276_v11  ;;  %p626_p3 = pnand %p625_p2, %p621_p13 }
  0x23   : > { %495 = vmatpush.msra.mxu1 %v275_v12  ;;  %497 = vmatpush.msra.mxu3 %v275_v12 }
  0x24   : > { %499 = vmatpush.msra.mxu2 %v274_v16  ;;  %290 = vmatpush.msra.mxu0 %v275_v12 }
  0x25   : > { %498 = vmatpush.msra.mxu1 %v274_v16  ;;  %500 = vmatpush.msra.mxu3 %v274_v16 }
  0x26   : > { %502 = vmatpush.msra.mxu2 %v273_v17  ;;  %291 = vmatpush.msra.mxu0 %v274_v16 }
  0x27   : > { %221 = vperm.xlu0 %572, %v183_v13   ;;  %188 = vperm.xlu1 %573, %v172_v14  }
  0x28   : > { %197 = vperm.xlu2 %574, %v175_v15   ;;  %505 = vmatpush.msra.mxu2 %v272_v18 }
  0x29   : > { %501 = vmatpush.msra.mxu1 %v273_v17  ;;  %503 = vmatpush.msra.mxu3 %v273_v17 }
  0x2a   : > { %508 = vmatpush.msra.mxu2 %v271_v19  ;;  %292 = vmatpush.msra.mxu0 %v273_v17 }
  0x2b   : > { %504 = vmatpush.msra.mxu1 %v272_v18  ;;  %506 = vmatpush.msra.mxu3 %v272_v18 }
  0x2c   : > { %293 = vmatpush.msra.mxu0 %v272_v18  ;;  %511 = vmatpush.msra.mxu2 %v270_v24 }
  0x2d   : > { %507 = vmatpush.msra.mxu1 %v271_v19  ;;  %509 = vmatpush.msra.mxu3 %v271_v19 }
  0x2e   : > { %294 = vmatpush.msra.mxu0 %v271_v19  ;;  %514 = vmatpush.msra.mxu2 %v269_v25 }
  0x2f   : > { %212 = vperm.xlu0 %572, %v180_v20   ;;  %224 = vperm.xlu1 %573, %v184_v21  }
  0x30   : > { %191 = vperm.xlu2 %574, %v173_v22   ;;  %510 = vmatpush.msra.mxu1 %v270_v24 }
  0x31   : > { %512 = vmatpush.msra.mxu3 %v270_v24  ;;  %295 = vmatpush.msra.mxu0 %v270_v24 }
  0x32   : > { %513 = vmatpush.msra.mxu1 %v269_v25  ;;  %517 = vmatpush.msra.mxu2 %v268_v26 }
  0x33   : > { %515 = vmatpush.msra.mxu3 %v269_v25  ;;  %296 = vmatpush.msra.mxu0 %v269_v25 }
  0x34   : > { %516 = vmatpush.msra.mxu1 %v268_v26  ;;  %520 = vmatpush.msra.mxu2 %v267_v27 }
  0x35   : > { %518 = vmatpush.msra.mxu3 %v268_v26  ;;  %297 = vmatpush.msra.mxu0 %v268_v26 }
  0x36   : > { %519 = vmatpush.msra.mxu1 %v267_v27  ;;  %523 = vmatpush.msra.mxu2 %v266_v28 }
  0x37   : > { %200 = vperm.xlu0 %572, %v176_v23   ;;  %521 = vmatpush.msra.mxu3 %v267_v27 }
  0x38   : > { %298 = vmatpush.msra.mxu0 %v267_v27  ;;  %522 = vmatpush.msra.mxu1 %v266_v28 }
  0x39   : > { %524 = vmatpush.msra.mxu3 %v266_v28  ;;  %526 = vmatpush.msra.mxu2 %v265_v29 }
  0x3a   : > { %299 = vmatpush.msra.mxu0 %v266_v28  ;;  %525 = vmatpush.msra.mxu1 %v265_v29 }
  0x3b   : > { %527 = vmatpush.msra.mxu3 %v265_v29 }
  0x3c   : > { %300 = vmatpush.msra.mxu0 %v265_v29 }
  0x72   : > { %v195_v32 = vpop.permute.xlu2 %194 }
  0x73   : > { %vm228_vm0 = vcmp.eq.s32.totalorder %v186_v31, %v195_v32 }
  0x74   : > { %465 = vmatmul.msk.f32.vlgmr.msra.gmra.mxu1 %vm228_vm0, %v667_v33 }
  0x7a   : > { %v210_v34 = vpop.permute.xlu2 %209 }
  0x7b   : > { %vm233_vm5 = vcmp.eq.s32.totalorder %v186_v31, %v210_v34 }
  0x82   : > { %v198_v35 = vpop.permute.xlu2 %197 }
  0x83   : > { %vm229_vm1 = vcmp.eq.s32.totalorder %v186_v31, %v198_v35 }
  0x84   : > { %466 = vmatmul.msk.f32.gmra.mxu1 %vm229_vm1, %v667_v33 }
  0x89   : > { %v207_v36 = vpop.permute.xlu1 %206  ;;  %v204_v37 = vpop.permute.xlu0 %203 }
  0x8a   : > { %vm231_vm2 = vcmp.eq.s32.totalorder %v186_v31, %v204_v37  ;;  %vm232_vm3 = vcmp.eq.s32.totalorder %v186_v31, %v207_v36  ;;  %v192_v42 = vpop.permute.xlu2 %191 }
  0x8b   : > { %468 = vmatmul.msk.f32.vlgmr.msra.gmra.mxu2 %vm231_vm2, %v667_v33  ;;  %vm227_vm8 = vcmp.eq.s32.totalorder %v186_v31, %v192_v42 }
  0x91   : > { %v219_v38 = vpop.permute.xlu1 %218  ;;  %v216_v39 = vpop.permute.xlu0 %215 }
  0x92   : > { %vm235_vm4 = vcmp.eq.s32.totalorder %v186_v31, %v216_v39  ;;  %vm236_vm7 = vcmp.eq.s32.totalorder %v186_v31, %v219_v38 }
  0x93   : > { %469 = vmatmul.msk.f32.gmra.mxu2 %vm232_vm3, %v667_v33  ;;  %472 = vmatmul.msk.f32.vlgmr.msra.gmra.mxu3 %vm235_vm4, %v667_v33 }
  0x99   : > { %v222_v40 = vpop.permute.xlu0 %221  ;;  %v189_v41 = vpop.permute.xlu1 %188 }
  0x9a   : > { %vm226_vm6 = vcmp.eq.s32.totalorder %v186_v31, %v189_v41  ;;  %vm237_vm10 = vcmp.eq.s32.totalorder %v186_v31, %v222_v40 }
  0x9b   : > { %463 = vmatmul.msk.f32.vlgmr.msra.gmra.mxu0 %vm226_vm6, %v667_v33  ;;  %470 = vmatmul.msk.f32.gmra.mxu2 %vm233_vm5, %v667_v33 }
  0x9c   : > { %473 = vmatmul.msk.f32.gmra.mxu3 %vm236_vm7, %v667_v33 }
  0xa1   : > { %v213_v43 = vpop.permute.xlu0 %212  ;;  %v225_v44 = vpop.permute.xlu1 %224 }
  0xa2   : > { %vm234_vm9 = vcmp.eq.s32.totalorder %v186_v31, %v213_v43  ;;  %vm238_vm12 = vcmp.eq.s32.totalorder %v186_v31, %v225_v44 }
  0xa3   : > { %464 = vmatmul.msk.f32.gmra.mxu0 %vm227_vm8, %v667_v33  ;;  %471 = vmatmul.msk.f32.gmra.mxu2 %vm234_vm9, %v667_v33 }
  0xa4   : > { %474 = vmatmul.msk.f32.gmra.mxu3 %vm237_vm10, %v667_v33 }
  0xa9   : > { %v201_v45 = vpop.permute.xlu0 %200 }
  0xaa   : > { %vm230_vm11 = vcmp.eq.s32.totalorder %v186_v31, %v201_v45 }
  0xab   : > { %467 = vmatmul.msk.f32.gmra.mxu1 %vm230_vm11, %v667_v33 }
  0xac   : > { %475 = vmatmul.msk.f32.gmra.mxu3 %vm238_vm12, %v667_v33 }
  0xf1   : > { %v308_v47 = vpop.f32.mrf.mxu1 }
  0xf2   : > { %v309_v48 = vadd.f32 %v808_v46, %v308_v47 }
  0xf4   : > { %576 = vtanh.f32 %v309_v48 }
  0xfa   : > { %v577_v49 = vpop.eup %576 }
  0xfb   : > { %356 = vst [vmem:[%s814_s30 + $0x10] sm:$0xff] %v577_v49 }
 0x101   : > { %v311_v50 = vpop.f32.mrf.mxu1 }
 0x102   : > { %v312_v51 = vadd.f32 %v808_v46, %v311_v50 }
 0x104   : > { %578 = vtanh.f32 %v312_v51 }
 0x10a   : > { %v579_v52 = vpop.eup %578 }
 0x10b   : > { %357 = vst [vmem:[%s814_s30 + $0x18] sm:$0xff] %v579_v52 }
 0x10e   : > { %v317_v53 = vpop.f32.mrf.mxu2 }
 0x10f   : > { %v318_v54 = vadd.f32 %v808_v46, %v317_v53 }
 0x111   : > { %580 = vtanh.f32 %v318_v54 }
 0x116   : > { %v320_v55 = vpop.f32.mrf.mxu2  ;;  %v329_v56 = vpop.f32.mrf.mxu3 }
 0x117   : > { %v581_v57 = vpop.eup %580  ;;  %v321_v58 = vadd.f32 %v808_v46, %v320_v55  ;;  %v330_v59 = vadd.f32 %v808_v46, %v329_v56 }
 0x118   : > { %359 = vst [vmem:[%s814_s30 + $0x28] sm:$0xff] %v581_v57  ;;  %v302_v60 = vpop.f32.mrf.mxu0 }
 0x119   : > { %582 = vtanh.f32 %v321_v58  ;;  %v303_v61 = vadd.f32 %v808_v46, %v302_v60 }
 0x11a   : > { %584 = vtanh.f32 %v330_v59 }
 0x11b   : > { %586 = vtanh.f32 %v303_v61 }
 0x11e   : > { %v323_v62 = vpop.f32.mrf.mxu2 }
 0x11f   : > { %v583_v63 = vpop.eup %582  ;;  %v324_v0 = vadd.f32 %v808_v46, %v323_v62  ;;  %v332_v1 = vpop.f32.mrf.mxu3 }
 0x120   : > { %v585_v2 = vpop.eup %584  ;;  %360 = vst [vmem:[%s814_s30 + $0x30] sm:$0xff] %v583_v63  ;;  %v333_v3 = vadd.f32 %v808_v46, %v332_v1  ;;  %v305_v4 = vpop.f32.mrf.mxu0 }
 0x121   : > { %v587_v5 = vpop.eup %586  ;;  %363 = vst [vmem:[%s814_s30 + $0x48] sm:$0xff] %v585_v2  ;;  %588 = vtanh.f32 %v324_v0  ;;  %v306_v6 = vadd.f32 %v808_v46, %v305_v4 }
 0x122   : > { %354 = vst [vmem:[%s814_s30] sm:$0xff] %v587_v5  ;;  %590 = vtanh.f32 %v333_v3 }
 0x123   : > { %592 = vtanh.f32 %v306_v6 }
 0x126   : > { %v326_v7 = vpop.f32.mrf.mxu2 }
 0x127   : > { %v589_v8 = vpop.eup %588  ;;  %v327_v9 = vadd.f32 %v808_v46, %v326_v7  ;;  %v335_v10 = vpop.f32.mrf.mxu3 }
 0x128   : > { %v591_v11 = vpop.eup %590  ;;  %361 = vst [vmem:[%s814_s30 + $0x38] sm:$0xff] %v589_v8  ;;  %v336_v12 = vadd.f32 %v808_v46, %v335_v10  ;;  %v314_v13 = vpop.f32.mrf.mxu1 }
 0x129   : > { %v593_v14 = vpop.eup %592  ;;  %364 = vst [vmem:[%s814_s30 + $0x50] sm:$0xff] %v591_v11  ;;  %594 = vtanh.f32 %v327_v9  ;;  %v315_v15 = vadd.f32 %v808_v46, %v314_v13 }
 0x12a   : > { %355 = vst [vmem:[%s814_s30 + $0x8] sm:$0xff] %v593_v14  ;;  %596 = vtanh.f32 %v336_v12 }
 0x12b   : > { %598 = vtanh.f32 %v315_v15 }
 0x12f   : > { %v595_v16 = vpop.eup %594  ;;  %v338_v17 = vpop.f32.mrf.mxu3 }
 0x130   : > { %v597_v18 = vpop.eup %596  ;;  %362 = vst [vmem:[%s814_s30 + $0x40] sm:$0xff] %v595_v16  ;;  %v339_v19 = vadd.f32 %v808_v46, %v338_v17 }
 0x131   : > { %v599_v20 = vpop.eup %598  ;;  %365 = vst [vmem:[%s814_s30 + $0x58] sm:$0xff] %v597_v18 }
 0x132   : > { %358 = vst [vmem:[%s814_s30 + $0x20] sm:$0xff] %v599_v20  ;;  %600 = vtanh.f32 %v339_v19 }
 0x138   : > { %v601_v21 = vpop.eup %600 }
 0x139   : > { %366 = vst [vmem:[%s814_s30 + $0x60] sm:$0xff] %v601_v21 }
 0x13a   : > { %629 = shalt.err (!%p626_p3)
}
 0x13b   : > { %s668_s25 = smov 128   ;;  %s669_s26 = smov 8  }
 0x13c   : > { %529 = dma.vmem_to_hbm [thread:$0]  (%p728_p5), %s381_s8, 1664, %s383_s9, %s368_s16, %s668_s25, %s668_s25, %s669_s26  }
 0x13d PF: > { %p535_p4 = scmp.ge.s32.totalorder %s664_s15, 2  ;;  %s397_s27 = sand.u32 1, %s652_s12  }
 0x13e   : > { %s398_s29 = scalar_lea.sflag [#allocation3], %s397_s27 }
 0x13f   : > { %p532_p7 = pnand %p535_p4, %p732_p6 }
 0x141   : > { %p533_p8 = pneg %p532_p7 }
 0x143   : > { %647 = dma.done.wait (%p533_p8), %s398_s29, 1664  }
 0x144   : > { %649 = vsyncadd (%p533_p8), %s398_s29, 4294965632  ;;  %p13_p9 = scmp.ge.s32.totalorder %s715_s18, 4   ;;  %s881_s12 = smov %s656_s13 }
 0x145   : > { %s882_s13 = smov %s660_s14  ;;  %s883_s14 = smov %s726_s21 }
 0x146   : > { %s884_s15 = smov %s715_s18  ;;  %15 = sbr.rel (!%p13_p9) target bundleno = 3 (0x3), region = 67 }
 0x14b   :  { %404 = vsyncpa [#allocation3], 1 }
 0x14c   :  { %406 = vsyncpa [#allocation3 + $0x1], 1 }

</bundles_post_ra>
